<compile_context>
chip_gen: v6e
topology: v6e:2x2x1
jax: 0.10.0
libtpu: 0.0.40
codegen_flags: <defaults>
</compile_context>

<pallas_src>
import functools

import numpy as np
import jax
import jax.numpy as jnp
from jax import lax
from jax.experimental import pallas as pl
from jax.experimental.pallas import tpu as pltpu

_NEG_BIG = -1.0e30  # additive mask for invalid (time, channel) positions


def _round_up(x, m):
    return ((x + m - 1) // m) * m


def _textcnn_kernel(x_ref, w_ref, b_ref, m_ref, o_ref, mx_ref, *,
                    k_max, fuse_taps, main_starts, main_len_c,
                    tail_start, tail_len, apply_relu):
    """One batch tile of TextCNNLayer: all conv branches + time max-pool.

    x_ref : (TB, Lp, E)       zero-padded input tile (compute dtype)
    w_ref : (k_max*E, F_pad)  packed weights if fuse_taps, else (k_max, E, F_pad)
    b_ref : (1, F_pad)        packed bias (f32)
    m_ref : (m_rows, F_pad)   additive validity mask for the tail chunk (f32)
    o_ref : (TB, F_pad)       pooled output tile
    mx_ref: (TB, F_pad)       f32 running-max scratch
    """
    TB, Lp, E = x_ref.shape
    F_pad = o_ref.shape[-1]

    def conv_chunk(start, length):
        # f32 conv values (TB*length, F_pad) for time positions [start, start+length).
        def part(j):
            # static slice; `length` is a multiple of 8, so the leading-dim
            # collapse is a free re-tiling.
            return x_ref[:, start + j:start + j + length, :].reshape(TB * length, E)

        if fuse_taps:
            if k_max == 1:
                win = part(0)
            else:
                win = jnp.concatenate([part(j) for j in range(k_max)], axis=-1)
            return jnp.dot(win, w_ref[...], preferred_element_type=jnp.float32)

        acc = jnp.dot(part(0), w_ref[0], preferred_element_type=jnp.float32)
        for j in range(1, k_max):
            acc = acc + jnp.dot(part(j), w_ref[j],
                                preferred_element_type=jnp.float32)
        return acc

    first = True
    # Main region: every branch is valid at every position -> no mask work.
    # Each chunk's MXU work is independent of mx_ref, so the matmul of chunk
    # i+1 can overlap the VPU/XLU max of chunk i.
    for s in main_starts:
        cm = jnp.max(conv_chunk(s, main_len_c).reshape(TB, main_len_c, F_pad),
                     axis=1)                               # (TB, F_pad)
        if first:
            mx_ref[...] = cm
            first = False
        else:
            mx_ref[...] = jnp.maximum(mx_ref[...], cm)

    # Tail chunk: only the last few positions can be invalid; mask just those.
    if tail_len > 0:
        t = conv_chunk(tail_start, tail_len).reshape(TB, tail_len, F_pad)
        t = t + m_ref[...]                                 # (tail_len, F_pad) bcast
        tm = jnp.max(t, axis=1)
        if first:
            mx_ref[...] = tm
        else:
            mx_ref[...] = jnp.maximum(mx_ref[...], tm)

    # Bias + (monotone) activation hoisted past the max-pool.
    pooled = mx_ref[...] + b_ref[...]
    if apply_relu:
        pooled = jnp.maximum(pooled, 0.0)
    o_ref[...] = pooled.astype(o_ref.dtype)


def _vmem_budget_bytes():
    """~75% of this generation's physical VMEM (48 MiB v7x, 96 MiB v5e/v6e)."""
    try:
        cap = int(pltpu.get_tpu_info().vmem_capacity_bytes)
    except Exception:
        cap = 64 * 1024 * 1024  # conservative fallback (v7x per-TC VMEM)
    return int(cap * 0.75)


def _pick_batch_tile(B, est_bytes, budget, min_steps):
    """Largest batch tile (multiple of 8 or B itself) whose live VMEM fits."""
    cands = sorted({d for d in range(8, B + 1, 8) if B % d == 0} | {B},
                   reverse=True)
    fallback = cands[-1]
    for tb in cands:
        if tb != fallback and B // tb < min_steps:
            continue
        if est_bytes(tb) <= budget:
            return tb
    return fallback


def textcnn_forward(x, w_packed, b_packed, filter_sizes, filter_num, *,
                    apply_relu, fuse_taps=None, compute_dtype=None,
                    chunk_rows=256):
    """Fused conv branches + max-pool + concat. Returns (B, filter_num*len(filter_sizes))."""
    B, L, E = x.shape
    k_max, E2, F_pad = w_packed.shape
    assert E == E2, "weight embedding dim must match input embedding dim"
    assert L >= k_max, "sequence must be at least as long as the largest filter"
    F_total = filter_num * len(filter_sizes)
    out_dtype = x.dtype
    cdt = jnp.dtype(compute_dtype) if compute_dtype is not None else x.dtype

    if fuse_taps is None:
        # E alone underutilizes the MXU contraction dim -> im2col-fuse the taps.
        fuse_taps = (k_max > 1) and (E < 256)

    # ---- static time-region bookkeeping ----
    l_valid = L - k_max + 1            # positions valid for every branch
    l_proc = _round_up(L, 8)           # processed conv positions (8-aligned)
    masked = l_proc - l_valid          # trailing positions that need a mask
    tail_len = min(_round_up(masked, 8), l_proc) if masked > 0 else 0
    tail_start = l_proc - tail_len
    main_len = l_proc - tail_len       # mask-free region, multiple of 8
    if main_len > 0:
        lc = min(main_len, _round_up(min(chunk_rows, main_len), 8))
        n_main = -(-main_len // lc)
        # Overlapping chunks are fine: all positions are mask-free, max is idempotent.
        main_starts = tuple(min(c * lc, main_len - lc) for c in range(n_main))
    else:
        lc = 8
        main_starts = ()
    lp = l_proc + k_max - 1            # padded time length fed to the kernel

    # Wrapper-side zero pad (tiny HBM-level op) replaces the old in-kernel concat.
    xp = x
    if lp > L:
        xp = jnp.pad(x, ((0, 0), (0, lp - L), (0, 0)))
    xp = xp.astype(cdt)

    w_in = w_packed.reshape(k_max * E, F_pad) if fuse_taps else w_packed
    w_in = w_in.astype(cdt)

    # Additive validity mask for the tail chunk only: position t = tail_start + r
    # is invalid for a branch of size k when t > L - k (and for every branch when t >= L).
    m_rows = max(tail_len, 1)
    m = np.zeros((m_rows, F_pad), np.float32)
    if tail_len > 0:
        for r in range(tail_len):
            t = tail_start + r
            for i, k in enumerate(filter_sizes):
                if t > L - k:
                    m[r, i * filter_num:(i + 1) * filter_num] = _NEG_BIG
    mask = jnp.asarray(m)

    # ---- VMEM-aware batch tile ----
    budget = _vmem_budget_bytes()
    ix = jnp.dtype(cdt).itemsize
    ox = jnp.dtype(out_dtype).itemsize
    K_mm = k_max * E if fuse_taps else E
    mc = max(lc if main_starts else 0, tail_len, 8)
    fixed = 2 * (w_in.size * ix + F_pad * 4 + m_rows * F_pad * 4)

    def est_bytes(tb):
        x_tile = 2 * tb * lp * E * ix            # double-buffered input tile
        out_tile = 2 * tb * F_pad * ox
        run_max = tb * F_pad * 4                 # running-max scratch
        chunk_acc = tb * mc * F_pad * 4          # per-chunk f32 conv values
        window = tb * mc * K_mm * ix             # im2col window / tap slice
        extra = 0 if fuse_taps else tb * mc * F_pad * 4
        return fixed + x_tile + out_tile + run_max + chunk_acc + window + extra + (2 << 20)

    min_steps = 2 if B >= 16 else 1              # keep both v7x TensorCores busy
    tb = _pick_batch_tile(B, est_bytes, budget, min_steps)
    grid = (B // tb,)

    kern = functools.partial(
        _textcnn_kernel, k_max=k_max, fuse_taps=fuse_taps,
        main_starts=main_starts, main_len_c=lc, tail_start=tail_start,
        tail_len=tail_len, apply_relu=apply_relu)

    if fuse_taps:
        w_spec = pl.BlockSpec((k_max * E, F_pad), lambda b: (0, 0))
    else:
        w_spec = pl.BlockSpec((k_max, E, F_pad), lambda b: (0, 0, 0))

    flops = int(2 * B * l_proc * k_max * E * F_pad)
    bytes_accessed = int(xp.size * ix + w_in.size * ix
                         + (1 + m_rows) * F_pad * 4 + B * F_pad * ox)

    out = pl.pallas_call(
        kern,
        out_shape=jax.ShapeDtypeStruct((B, F_pad), out_dtype),
        grid_spec=pltpu.PrefetchScalarGridSpec(
            num_scalar_prefetch=0,
            grid=grid,
            in_specs=[
                pl.BlockSpec((tb, lp, E), lambda b: (b, 0, 0)),
                w_spec,
                pl.BlockSpec((1, F_pad), lambda b: (0, 0)),
                pl.BlockSpec((m_rows, F_pad), lambda b: (0, 0)),
            ],
            out_specs=pl.BlockSpec((tb, F_pad), lambda b: (b, 0)),
            scratch_shapes=[pltpu.VMEM((tb, F_pad), jnp.float32)],
        ),
        compiler_params=pltpu.CompilerParams(
            dimension_semantics=("parallel",),
            vmem_limit_bytes=int(budget + (4 << 20)),
        ),
        cost_estimate=pl.CostEstimate(flops=flops, transcendentals=0,
                                      bytes_accessed=bytes_accessed),
    )(xp, w_in, b_packed, mask)
    return out[:, :F_total]


class TextCNNLayerPallas:
    """Pallas equivalent of faknow TextCNNLayer (conv branches + max-pool + concat)."""

    def __init__(self, embedding_dim, filter_num, filter_sizes, activate_fn=None,
                 key=None, fuse_taps=None, compute_dtype=None):
        # TODO(synk): arbitrary activate_fn callables are not supported in-kernel;
        # only None / "relu" (monotone, so it can be hoisted past the max-pool).
        assert activate_fn in (None, "relu")
        self.embedding_dim = embedding_dim
        self.filter_num = filter_num
        self.filter_sizes = list(filter_sizes)
        self.activate_fn = activate_fn
        self.fuse_taps = fuse_taps
        self.compute_dtype = compute_dtype
        if key is None:
            key = jax.random.PRNGKey(42)

        k_max = max(self.filter_sizes)
        F_total = filter_num * len(self.filter_sizes)
        self.f_pad = _round_up(F_total, 128)     # lane-dense packed channels

        self.weights, self.biases = [], []
        w_packed = np.zeros((k_max, embedding_dim, self.f_pad), np.float32)
        b_packed = np.zeros((1, self.f_pad), np.float32)
        for i, k in enumerate(self.filter_sizes):
            key, wk, bk = jax.random.split(key, 3)
            fan_in = k * embedding_dim           # Conv2d(1, F, (k, E)) fan-in
            bound = 1.0 / float(np.sqrt(fan_in))
            # stored per-branch as (k, E, F) = PyTorch weight (F, 1, k, E) transposed
            w = jax.random.uniform(wk, (k, embedding_dim, filter_num),
                                   jnp.float32, -bound, bound)
            b = jax.random.uniform(bk, (1, filter_num), jnp.float32, -bound, bound)
            self.weights.append(w)
            self.biases.append(b)
            lo = i * filter_num
            w_packed[:k, :, lo:lo + filter_num] = np.asarray(w)
            b_packed[0, lo:lo + filter_num] = np.asarray(b).reshape(-1)
        self.w_packed = jnp.asarray(w_packed)
        self.b_packed = jnp.asarray(b_packed)

    def __call__(self, embedded_text):
        # embedded_text: (B, L, E) -> (B, filter_num * len(filter_sizes))
        return textcnn_forward(embedded_text, self.w_packed, self.b_packed,
                               self.filter_sizes, self.filter_num,
                               apply_relu=(self.activate_fn == "relu"),
                               fuse_taps=self.fuse_taps,
                               compute_dtype=self.compute_dtype)

    def reference(self, embedded_text):
        """Pure-JAX reference mirroring the PyTorch NCHW conv path."""
        x4 = embedded_text[:, None, :, :].astype(jnp.float32)  # (B, 1, L, E)
        pooled = []
        for w, b in zip(self.weights, self.biases):
            w4 = jnp.transpose(w, (2, 0, 1))[:, None, :, :]    # OIHW (F, 1, k, E)
            conv = lax.conv_general_dilated(
                x4, w4, window_strides=(1, 1), padding="VALID",
                dimension_numbers=("NCHW", "OIHW", "NCHW"))     # (B, F, Lout, 1)
            conv = conv + b.reshape(1, -1, 1, 1)
            conv = conv[..., 0]                                 # (B, F, Lout)
            if self.activate_fn == "relu":
                conv = jnp.maximum(conv, 0.0)
            pooled.append(jnp.max(conv, axis=2))                # (B, F)
        return jnp.concatenate(pooled, axis=1)


if __name__ == "__main__":
    batch_size, max_len, embedding_dim = 2, 16, 32
    filter_num, filter_sizes = 8, [2, 3, 4]

    root = jax.random.PRNGKey(0)
    xkey, pkey = jax.random.split(root)
    x = jax.random.normal(xkey, (batch_size, max_len, embedding_dim), jnp.float32)

    def check(layer):
        out = jax.block_until_ready(layer(x))
        ref = jax.block_until_ready(layer.reference(x))
        assert out.shape == (batch_size, filter_num * len(filter_sizes)), out.shape
        assert jnp.allclose(out, ref, atol=1e-4, rtol=1e-4), \
            f"max abs err {jnp.max(jnp.abs(out - ref))}"

    # Default PyTorch config (activate_fn=None); E=32 -> fused-tap (im2col) path.
    check(TextCNNLayerPallas(embedding_dim, filter_num, filter_sizes,
                             activate_fn=None, key=pkey))
    # ReLU variant (exercises the hoisted-activation path).
    check(TextCNNLayerPallas(embedding_dim, filter_num, filter_sizes,
                             activate_fn="relu", key=pkey))
    # Forced per-tap (non-fused) path, used when k_max*E would over-build the window.
    check(TextCNNLayerPallas(embedding_dim, filter_num, filter_sizes,
                             activate_fn=None, key=pkey, fuse_taps=False))

    print("KERNEL_OK")
</pallas_src>

<mosaic_0001>
module attributes {stable_mosaic.version = 11 : i64} {
  func.func @_textcnn_kernel(%arg0: i32, %arg1: memref<2x19x32xf32, #tpu.memory_space<vmem>>, %arg2: memref<128x128xf32, #tpu.memory_space<vmem>>, %arg3: memref<1x128xf32, #tpu.memory_space<vmem>>, %arg4: memref<8x128xf32, #tpu.memory_space<vmem>>, %arg5: memref<2x128xf32, #tpu.memory_space<vmem>>, %arg6: memref<2x128xf32, #tpu.memory_space<vmem>>) attributes {dimension_semantics = [#tpu.dimension_semantics<parallel>], iteration_bounds = array<i64: 1>, scalar_prefetch = 0 : i64, scratch_operands = 1 : i64, tpu.core_type = #tpu.core_type<tc>, window_params = [{transform_indices = @transform_0, window_bounds = array<i64: 2, 19, 32>}, {pipeline_mode = #tpu.pipeline_mode<synchronous>, transform_indices = @transform_1, window_bounds = array<i64: 128, 128>}, {pipeline_mode = #tpu.pipeline_mode<synchronous>, transform_indices = @transform_2, window_bounds = array<i64: 1, 128>}, {pipeline_mode = #tpu.pipeline_mode<synchronous>, transform_indices = @transform_3, window_bounds = array<i64: 8, 128>}, {transform_indices = @transform_4, window_bounds = array<i64: 2, 128>}]} {
    %c0 = arith.constant 0 : index
    %c0_0 = arith.constant 0 : index
    %c0_1 = arith.constant 0 : index
    %0 = vector.load %arg1[%c0, %c0_0, %c0_1] : memref<2x19x32xf32, #tpu.memory_space<vmem>>, vector<2x8x32xf32>
    %1 = vector.shape_cast %0 : vector<2x8x32xf32> to vector<16x32xf32>
    %c0_2 = arith.constant 0 : index
    %c1 = arith.constant 1 : index
    %c0_3 = arith.constant 0 : index
    %2 = vector.load %arg1[%c0_2, %c1, %c0_3] : memref<2x19x32xf32, #tpu.memory_space<vmem>>, vector<2x8x32xf32>
    %3 = vector.shape_cast %2 : vector<2x8x32xf32> to vector<16x32xf32>
    %c0_4 = arith.constant 0 : index
    %c2 = arith.constant 2 : index
    %c0_5 = arith.constant 0 : index
    %4 = vector.load %arg1[%c0_4, %c2, %c0_5] : memref<2x19x32xf32, #tpu.memory_space<vmem>>, vector<2x8x32xf32>
    %5 = vector.shape_cast %4 : vector<2x8x32xf32> to vector<16x32xf32>
    %c0_6 = arith.constant 0 : index
    %c3 = arith.constant 3 : index
    %c0_7 = arith.constant 0 : index
    %6 = vector.load %arg1[%c0_6, %c3, %c0_7] : memref<2x19x32xf32, #tpu.memory_space<vmem>>, vector<2x8x32xf32>
    %7 = vector.shape_cast %6 : vector<2x8x32xf32> to vector<16x32xf32>
    %8 = tpu.concatenate %1, %3, %5, %7 in 1 : vector<16x32xf32>, vector<16x32xf32>, vector<16x32xf32>, vector<16x32xf32> -> vector<16x128xf32>
    %c0_8 = arith.constant 0 : index
    %c0_9 = arith.constant 0 : index
    %9 = vector.load %arg2[%c0_8, %c0_9] : memref<128x128xf32, #tpu.memory_space<vmem>>, vector<128x128xf32>
    %cst = arith.constant dense<0.000000e+00> : vector<16x128xf32>
    %10 = tpu.matmul %8, %9, %cst {dimension_numbers = #tpu.dot_dimension_numbers<[1], [0], [0], [1], [0, 0, 1, 1], [], []>} : vector<16x128xf32>, vector<128x128xf32>, vector<16x128xf32> -> vector<16x128xf32>
    %11 = vector.shape_cast %10 : vector<16x128xf32> to vector<2x8x128xf32>
    %cst_10 = arith.constant dense<0xFF800000> : vector<2x128xf32>
    %12 = vector.multi_reduction <maximumf>, %11, %cst_10 [1] : vector<2x8x128xf32> to vector<2x128xf32>
    %c0_11 = arith.constant 0 : index
    %c0_12 = arith.constant 0 : index
    %13 = vector.load %arg6[%c0_11, %c0_12] : memref<2x128xf32, #tpu.memory_space<vmem>>, vector<2x128xf32>
    tpu.vector_store %arg6[%c0_11, %c0_12], %12 {strides = array<i32>} : memref<2x128xf32, #tpu.memory_space<vmem>>, vector<2x128xf32>,
    %c0_13 = arith.constant 0 : index
    %c8 = arith.constant 8 : index
    %c0_14 = arith.constant 0 : index
    %14 = vector.load %arg1[%c0_13, %c8, %c0_14] : memref<2x19x32xf32, #tpu.memory_space<vmem>>, vector<2x8x32xf32>
    %15 = vector.shape_cast %14 : vector<2x8x32xf32> to vector<16x32xf32>
    %c0_15 = arith.constant 0 : index
    %c9 = arith.constant 9 : index
    %c0_16 = arith.constant 0 : index
    %16 = vector.load %arg1[%c0_15, %c9, %c0_16] : memref<2x19x32xf32, #tpu.memory_space<vmem>>, vector<2x8x32xf32>
    %17 = vector.shape_cast %16 : vector<2x8x32xf32> to vector<16x32xf32>
    %c0_17 = arith.constant 0 : index
    %c10 = arith.constant 10 : index
    %c0_18 = arith.constant 0 : index
    %18 = vector.load %arg1[%c0_17, %c10, %c0_18] : memref<2x19x32xf32, #tpu.memory_space<vmem>>, vector<2x8x32xf32>
    %19 = vector.shape_cast %18 : vector<2x8x32xf32> to vector<16x32xf32>
    %c0_19 = arith.constant 0 : index
    %c11 = arith.constant 11 : index
    %c0_20 = arith.constant 0 : index
    %20 = vector.load %arg1[%c0_19, %c11, %c0_20] : memref<2x19x32xf32, #tpu.memory_space<vmem>>, vector<2x8x32xf32>
    %21 = vector.shape_cast %20 : vector<2x8x32xf32> to vector<16x32xf32>
    %22 = tpu.concatenate %15, %17, %19, %21 in 1 : vector<16x32xf32>, vector<16x32xf32>, vector<16x32xf32>, vector<16x32xf32> -> vector<16x128xf32>
    %c0_21 = arith.constant 0 : index
    %c0_22 = arith.constant 0 : index
    %23 = vector.load %arg2[%c0_21, %c0_22] : memref<128x128xf32, #tpu.memory_space<vmem>>, vector<128x128xf32>
    %cst_23 = arith.constant dense<0.000000e+00> : vector<16x128xf32>
    %24 = tpu.matmul %22, %23, %cst_23 {dimension_numbers = #tpu.dot_dimension_numbers<[1], [0], [0], [1], [0, 0, 1, 1], [], []>} : vector<16x128xf32>, vector<128x128xf32>, vector<16x128xf32> -> vector<16x128xf32>
    %25 = vector.shape_cast %24 : vector<16x128xf32> to vector<2x8x128xf32>
    %c0_24 = arith.constant 0 : index
    %c0_25 = arith.constant 0 : index
    %26 = vector.load %arg4[%c0_24, %c0_25] : memref<8x128xf32, #tpu.memory_space<vmem>>, vector<8x128xf32>
    %27 = vector.shape_cast %26 : vector<8x128xf32> to vector<1x8x128xf32>
    %28 = vector.broadcast %27 : vector<1x8x128xf32> to vector<2x8x128xf32>
    %29 = arith.addf %25, %28 : vector<2x8x128xf32>
    %cst_26 = arith.constant dense<0xFF800000> : vector<2x128xf32>
    %30 = vector.multi_reduction <maximumf>, %29, %cst_26 [1] : vector<2x8x128xf32> to vector<2x128xf32>
    %c0_27 = arith.constant 0 : index
    %c0_28 = arith.constant 0 : index
    %31 = vector.load %arg6[%c0_27, %c0_28] : memref<2x128xf32, #tpu.memory_space<vmem>>, vector<2x128xf32>
    %32 = arith.maximumf %31, %30 : vector<2x128xf32>
    %c0_29 = arith.constant 0 : index
    %c0_30 = arith.constant 0 : index
    %33 = vector.load %arg6[%c0_29, %c0_30] : memref<2x128xf32, #tpu.memory_space<vmem>>, vector<2x128xf32>
    tpu.vector_store %arg6[%c0_29, %c0_30], %32 {strides = array<i32>} : memref<2x128xf32, #tpu.memory_space<vmem>>, vector<2x128xf32>,
    %c0_31 = arith.constant 0 : index
    %c0_32 = arith.constant 0 : index
    %34 = vector.load %arg6[%c0_31, %c0_32] : memref<2x128xf32, #tpu.memory_space<vmem>>, vector<2x128xf32>
    %c0_33 = arith.constant 0 : index
    %c0_34 = arith.constant 0 : index
    %35 = vector.load %arg3[%c0_33, %c0_34] : memref<1x128xf32, #tpu.memory_space<vmem>>, vector<1x128xf32>
    %36 = vector.broadcast %35 : vector<1x128xf32> to vector<2x128xf32>
    %37 = arith.addf %34, %36 : vector<2x128xf32>
    %c0_35 = arith.constant 0 : index
    %c0_36 = arith.constant 0 : index
    %38 = vector.load %arg5[%c0_35, %c0_36] : memref<2x128xf32, #tpu.memory_space<vmem>>, vector<2x128xf32>
    tpu.vector_store %arg5[%c0_35, %c0_36], %37 {strides = array<i32>} : memref<2x128xf32, #tpu.memory_space<vmem>>, vector<2x128xf32>,
    return
  }
  func.func @transform_0(%arg0: i32) -> (i32, i32, i32) {
    %c0_i32 = arith.constant 0 : i32
    %c0_i32_0 = arith.constant 0 : i32
    %c0_i32_1 = arith.constant 0 : i32
    return %arg0, %c0_i32, %c0_i32_0 : i32, i32, i32
  }
  func.func @transform_1(%arg0: i32) -> (i32, i32) {
    %c0_i32 = arith.constant 0 : i32
    %c0_i32_0 = arith.constant 0 : i32
    %c0_i32_1 = arith.constant 0 : i32
    return %c0_i32, %c0_i32_0 : i32, i32
  }
  func.func @transform_2(%arg0: i32) -> (i32, i32) {
    %c0_i32 = arith.constant 0 : i32
    %c0_i32_0 = arith.constant 0 : i32
    %c0_i32_1 = arith.constant 0 : i32
    return %c0_i32, %c0_i32_0 : i32, i32
  }
  func.func @transform_3(%arg0: i32) -> (i32, i32) {
    %c0_i32 = arith.constant 0 : i32
    %c0_i32_0 = arith.constant 0 : i32
    %c0_i32_1 = arith.constant 0 : i32
    return %c0_i32, %c0_i32_0 : i32, i32
  }
  func.func @transform_4(%arg0: i32) -> (i32, i32) {
    %c0_i32 = arith.constant 0 : i32
    %c0_i32_0 = arith.constant 0 : i32
    return %arg0, %c0_i32 : i32, i32
  }
}

</mosaic_0001>

<bundles_post_ra>
// kernel: tpu_custom_call.1
= control target key start
LH: loop header
LB: loop body
LE: loop exit
PB: predicated region body
PF: predicated region fallthrough
CT: control target
= control target key end

     0   :  { %9 = vsyncpa [#allocation4], 0  ;;  %s650_s0 = inlined_call_operand.vmem [shape: f32[2,19,32], index: 0, kind: input, shape index: {}]   ;;  %s651_s1 = inlined_call_operand.hbm [shape: f32[128,128], index: 1, kind: input, shape index: {}]   ;;  %s652_s2 = inlined_call_operand.vmem [shape: f32[1,128], index: 2, kind: input, shape index: {}]   ;;  %s653_s3 = inlined_call_operand.vmem [shape: f32[8,128], index: 3, kind: input, shape index: {}]   ;;  %s654_s4 = inlined_call_operand.hbm [shape: f32[2,128], index: 4, kind: output, shape index: {}]  }
   0x1   :  { %10 = vsyncpa [#allocation5], 0  ;;  %s546_s15 = smov [#allocation3]  }
   0x2   :  { %s18_s16 = sshll.u32 %s546_s15, 4  ;;  %s19_s16 = int_to_ptr.vmem [resolvable:$true] %s18_s16 }
   0x3   :  { %s510_s17 = scalar_lea.vmem %s19_s16, 2048  ;;  %p515_p1 = scmp.lt.s32.totalorder %s19_s16, %s19_s16 }
   0x4   :  { %p511_p0 = scmp.ne.s32.totalorder %s19_s16, %s510_s17  ;;  %p516_p2 = scmp.lt.s32.totalorder %s510_s17, %s510_s17 }
   0x6   :  { %p517_p3 = por %p516_p2, %p515_p1 }
   0x8   :  { %p518_p4 = pnand %p517_p3, %p511_p0 }
   0xa   :  { %521 = shalt.err (!%p518_p4)
}
   0xb   :  { %s547_s18 = smov 128   ;;  %s548_s19 = smov 8  }
   0xc   :  { %24 = dma.hbm_to_vmem [thread:$0]  %s651_s1, 2048, %s19_s16, [#allocation4], %s547_s18, %s547_s18, %s548_s19  }
   0xd   :  { %542 = dma.done.wait [#allocation4], 2048  }
   0xe   :  { %543 = vsyncadd [#allocation4], 4294965248  ;;  %v34_v0 = vld [vmem:[%s650_s0 + $0x1] sm:$0xff]  ;;  %v35_v1 = vld [vmem:[%s650_s0 + $0x19] sm:$0xff]  ;;  %s549_s11 = smov 32   ;;  %s550_s14 = smov 96  }
   0xf   :  { %v38_v2 = vld [vmem:[%s650_s0 + $0x3] sm:$0xff]  ;;  %v472_v3 = vpack.i.bf16 %v35_v1, %v34_v0  ;;  %v39_v4 = vld [vmem:[%s650_s0 + $0x1b] sm:$0xff]  ;;  %v87_v15 = vld [vmem:[#allocation3 + $0x70] sm:$0xff]  ;;  %s551_s21 = smov 64   ;;  %vm64_vm0 = vcmask 261120   ;;  %vm67_vm1 = vcmask 523264  }
  0x10   :  { %v36_v5 = vld [vmem:[%s650_s0 + $0x2] sm:$0xff]  ;;  %v37_v6 = vld [vmem:[%s650_s0 + $0x1a] sm:$0xff]  ;;  %v482_v7 = vpack.i.bf16 %v39_v4, %v38_v2  ;;  %v186_v11 = vld [vmem:[%s650_s0 + $0xa] sm:$0xff]  ;;  %vm70_vm2 = vcmask 785408   ;;  %vm178_vm3 = vcmask 1041409   ;;  %s552_s5 = smov [#allocation6]  }
  0x11   :  { %v184_v8 = vld [vmem:[%s650_s0 + $0x9] sm:$0xff]  ;;  %v185_v9 = vld [vmem:[%s650_s0 + $0x21] sm:$0xff]  ;;  %473 = vrot.lane.b32.xlu0 %v472_v3, %s549_s11  ;;  %v477_v10 = vpack.i.bf16 %v37_v6, %v36_v5  ;;  %v83_v23 = vld [vmem:[#allocation3 + $0x50] sm:$0xff]  ;;  %s349_s6 = sshll.u32 %s552_s5, 4  ;;  %s350_s6 = int_to_ptr.vmem [resolvable:$true] %s349_s6 }
  0x12   :  { %483 = vrot.lane.b32.xlu1 %v482_v7, %s550_s14  ;;  %v487_v12 = vpack.i.bf16 %v185_v9, %v184_v8  ;;  %v187_v13 = vld [vmem:[%s650_s0 + $0x22] sm:$0xff]  ;;  %v88_v14 = vld [vmem:[#allocation3 + $0x78] sm:$0xff]  ;;  %v188_v16 = vld [vmem:[%s650_s0 + $0xb] sm:$0xff]  ;;  %s522_s7 = scalar_lea.vmem %s350_s6, 32  ;;  %p527_p6 = scmp.lt.s32.totalorder %s350_s6, %s350_s6 }
  0x13   :  { %v189_v17 = vld [vmem:[%s650_s0 + $0x23] sm:$0xff]  ;;  %395 = vmatprep.subr.mxu0 %v88_v14  ;;  %430 = vmatprep.subr.mxu1 %v88_v14  ;;  %v492_v19 = vpack.i.bf16 %v187_v13, %v186_v11  ;;  %v84_v22 = vld [vmem:[#allocation3 + $0x58] sm:$0xff]  ;;  %v79_v27 = vld [vmem:[#allocation3 + $0x30] sm:$0xff]  ;;  %p523_p5 = scmp.ne.s32.totalorder %s350_s6, %s522_s7  ;;  %p528_p7 = scmp.lt.s32.totalorder %s522_s7, %s522_s7 }
  0x14   :  { %396 = vmatpush3.msra.mxu0 %v88_v14  ;;  %v86_v18 = vld [vmem:[#allocation3 + $0x68] sm:$0xff]  ;;  %431 = vmatpush3.msra.mxu1 %v88_v14  ;;  %v497_v20 = vpack.i.bf16 %v189_v17, %v188_v16  ;;  %v85_v21 = vld [vmem:[#allocation3 + $0x60] sm:$0xff]  ;;  %v80_v26 = vld [vmem:[#allocation3 + $0x38] sm:$0xff] }
  0x15   :  { %478 = vrot.lane.b32.xlu0 %v477_v10, %s551_s21  ;;  %397 = vmatprep.subr.mxu0 %v87_v15  ;;  %v82_v24 = vld [vmem:[#allocation3 + $0x48] sm:$0xff]  ;;  %v81_v25 = vld [vmem:[#allocation3 + $0x40] sm:$0xff]  ;;  %v76_v30 = vld [vmem:[#allocation3 + $0x18] sm:$0xff]  ;;  %p529_p8 = por %p528_p7, %p527_p6 }
  0x16   :  { %488 = vrot.lane.b32.xlu1 %v487_v12, %s549_s11  ;;  %398 = vmatpush3.msra.mxu0 %v87_v15  ;;  %v78_v28 = vld [vmem:[#allocation3 + $0x28] sm:$0xff]  ;;  %v77_v29 = vld [vmem:[#allocation3 + $0x20] sm:$0xff]  ;;  %v75_v31 = vld [vmem:[#allocation3 + $0x10] sm:$0xff] }
  0x17   :  { %399 = vmatprep.subr.mxu0 %v86_v18  ;;  %432 = vmatprep.subr.mxu1 %v87_v15  ;;  %v74_v32 = vld [vmem:[#allocation3 + $0x8] sm:$0xff]  ;;  %v73_v33 = vld [vmem:[#allocation3] sm:$0xff]  ;;  %v33_v39 = vld [vmem:[%s650_s0 + $0x18] sm:$0xff]  ;;  %p530_p9 = pnand %p529_p8, %p523_p5 }
  0x18   :  { %400 = vmatpush3.msra.mxu0 %v86_v18  ;;  %433 = vmatpush3.msra.mxu1 %v87_v15  ;;  %v32_v38 = vld [vmem:[%s650_s0] sm:$0xff]  ;;  %v182_v46 = vld [vmem:[%s650_s0 + $0x8] sm:$0xff] }
  0x19   :  { %493 = vrot.lane.b32.xlu0 %v492_v19, %s551_s21  ;;  %401 = vmatprep.subr.mxu0 %v85_v21  ;;  %v183_v47 = vld [vmem:[%s650_s0 + $0x20] sm:$0xff] }
  0x1a   :  { %498 = vrot.lane.b32.xlu1 %v497_v20, %s550_s14  ;;  %402 = vmatpush3.msra.mxu0 %v85_v21  ;;  %v311_v7 = vld [vmem:[%s653_s3] sm:$0xff] }
  0x1b   :  { %403 = vmatprep.subr.mxu0 %v84_v22  ;;  %434 = vmatprep.subr.mxu1 %v86_v18 }
  0x1c   :  { %404 = vmatpush3.msra.mxu0 %v84_v22  ;;  %435 = vmatpush3.msra.mxu1 %v86_v18 }
  0x1d   :  { %405 = vmatprep.subr.mxu0 %v83_v23  ;;  %436 = vmatprep.subr.mxu1 %v85_v21 }
  0x1e   :  { %406 = vmatpush3.msra.mxu0 %v83_v23  ;;  %437 = vmatpush3.msra.mxu1 %v85_v21 }
  0x1f   :  { %407 = vmatprep.subr.mxu0 %v82_v24  ;;  %438 = vmatprep.subr.mxu1 %v84_v22 }
  0x20   :  { %408 = vmatpush3.msra.mxu0 %v82_v24  ;;  %439 = vmatpush3.msra.mxu1 %v84_v22 }
  0x21   :  { %409 = vmatprep.subr.mxu0 %v81_v25  ;;  %440 = vmatprep.subr.mxu1 %v83_v23 }
  0x22   :  { %410 = vmatpush3.msra.mxu0 %v81_v25  ;;  %441 = vmatpush3.msra.mxu1 %v83_v23 }
  0x23   :  { %411 = vmatprep.subr.mxu0 %v80_v26  ;;  %442 = vmatprep.subr.mxu1 %v82_v24 }
  0x24   :  { %412 = vmatpush3.msra.mxu0 %v80_v26  ;;  %443 = vmatpush3.msra.mxu1 %v82_v24 }
  0x25   :  { %413 = vmatprep.subr.mxu0 %v79_v27  ;;  %444 = vmatprep.subr.mxu1 %v81_v25 }
  0x26   :  { %414 = vmatpush3.msra.mxu0 %v79_v27  ;;  %445 = vmatpush3.msra.mxu1 %v81_v25 }
  0x27   :  { %415 = vmatprep.subr.mxu0 %v78_v28  ;;  %446 = vmatprep.subr.mxu1 %v80_v26 }
  0x28   :  { %416 = vmatpush3.msra.mxu0 %v78_v28  ;;  %447 = vmatpush3.msra.mxu1 %v80_v26 }
  0x29   :  { %417 = vmatprep.subr.mxu0 %v77_v29  ;;  %448 = vmatprep.subr.mxu1 %v79_v27 }
  0x2a   :  { %418 = vmatpush3.msra.mxu0 %v77_v29  ;;  %449 = vmatpush3.msra.mxu1 %v79_v27 }
  0x2b   :  { %419 = vmatprep.subr.mxu0 %v76_v30  ;;  %450 = vmatprep.subr.mxu1 %v78_v28 }
  0x2c   :  { %420 = vmatpush3.msra.mxu0 %v76_v30  ;;  %451 = vmatpush3.msra.mxu1 %v78_v28 }
  0x2d   :  { %421 = vmatprep.subr.mxu0 %v75_v31  ;;  %452 = vmatprep.subr.mxu1 %v77_v29 }
  0x2e   :  { %422 = vmatpush3.msra.mxu0 %v75_v31  ;;  %453 = vmatpush3.msra.mxu1 %v77_v29 }
  0x2f   :  { %423 = vmatprep.subr.mxu0 %v74_v32  ;;  %454 = vmatprep.subr.mxu1 %v76_v30 }
  0x30   :  { %424 = vmatpush3.msra.mxu0 %v74_v32  ;;  %455 = vmatpush3.msra.mxu1 %v76_v30 }
  0x31   :  { %425 = vmatprep.subr.mxu0 %v73_v33  ;;  %456 = vmatprep.subr.mxu1 %v75_v31 }
  0x32   :  { %426 = vmatpush3.msra.mxu0 %v73_v33  ;;  %457 = vmatpush3.msra.mxu1 %v75_v31 }
  0x33   :  { %458 = vmatprep.subr.mxu1 %v74_v32 }
  0x34   :  { %459 = vmatpush3.msra.mxu1 %v74_v32 }
  0x35   :  { %460 = vmatprep.subr.mxu1 %v73_v33 }
  0x36   :  { %461 = vmatpush3.msra.mxu1 %v73_v33 }
  0x83   :  { %v474_v34 = vpop.permute.xlu0 %473 }
  0x84   :  { %v484_v35 = vpop.permute.xlu1 %483  ;;  %v476_v36 = vunpack.i.h.bf16 %v474_v34  ;;  %v475_v37 = vunpack.i.l.bf16 %v474_v34 }
  0x85   :  { %v486_v41 = vunpack.i.h.bf16 %v484_v35  ;;  %v485_v42 = vunpack.i.l.bf16 %v484_v35 }
  0x86   :  { %v65_v50 = vsel %vm64_vm0, %v32_v38, %v475_v37  ;;  %v66_v51 = vsel %vm64_vm0, %v33_v39, %v476_v36  ;;  %v358_v39 = vld [vmem:[%s652_s2] ss:$0 sm:$0xff] }
  0x87   :  { %v479_v40 = vpop.permute.xlu0 %478 }
  0x88   :  { %v481_v43 = vunpack.i.h.bf16 %v479_v40  ;;  %v480_v44 = vunpack.i.l.bf16 %v479_v40  ;;  %v489_v45 = vpop.permute.xlu1 %488 }
  0x89   :  { %v491_v48 = vunpack.i.h.bf16 %v489_v45  ;;  %v490_v49 = vunpack.i.l.bf16 %v489_v45 }
  0x8a   :  { %v68_v52 = vsel %vm67_vm1, %v65_v50, %v480_v44  ;;  %v69_v53 = vsel %vm67_vm1, %v66_v51, %v481_v43 }
  0x8b   :  { %v494_v54 = vpop.permute.xlu0 %493  ;;  %v71_v55 = vsel %vm70_vm2, %v68_v52, %v485_v42  ;;  %v72_v56 = vsel %vm70_vm2, %v69_v53, %v486_v41  ;;  %v214_v57 = vsel %vm64_vm0, %v182_v46, %v490_v49  ;;  %v215_v58 = vsel %vm64_vm0, %v183_v47, %v491_v48 }
  0x8c   :  { %v496_v59 = vunpack.i.h.bf16 %v494_v54  ;;  %v495_v60 = vunpack.i.l.bf16 %v494_v54  ;;  %v499_v61 = vpop.permute.xlu1 %498  ;;  %427 = vmatprep.mubr.f32.mxu0 %v71_v55 }
  0x8d   :  { %v501_v62 = vunpack.i.h.bf16 %v499_v61  ;;  %v500_v63 = vunpack.i.l.bf16 %v499_v61  ;;  %428 = vmatmul.mubr.f32.vlgmr.msra.gmra.mxu0 %v72_v56 }
  0x8e   :  { %v216_v0 = vsel %vm67_vm1, %v214_v57, %v495_v60  ;;  %v217_v1 = vsel %vm67_vm1, %v215_v58, %v496_v59 }
  0x8f   :  { %v218_v2 = vsel %vm70_vm2, %v216_v0, %v500_v63  ;;  %v219_v3 = vsel %vm70_vm2, %v217_v1, %v501_v62 }
  0x90   :  { %462 = vmatprep.mubr.f32.mxu1 %v218_v2 }
  0x91   :  { %463 = vmatmul.mubr.f32.vlgmr.msra.gmra.mxu1 %v219_v3 }
 0x14d   :  { %v429_v4 = vpop.f32.mrf.mxu0 }
 0x14e   :  { %v170_v5 = vrot.slane %v429_v4, 4 }
 0x14f   :  { %v155_v6 = vpop.f32.mrf.mxu0 }
 0x150   :  { %v171_v8 = vmax.f32 %v429_v4, %v170_v5  ;;  %v164_v9 = vrot.slane %v155_v6, 4 }
 0x151   :  { %v464_v10 = vpop.f32.mrf.mxu1 }
 0x152   :  { %v172_v11 = vrot.slane %v171_v8, 2  ;;  %v165_v12 = vmax.f32 %v155_v6, %v164_v9  ;;  %v313_v13 = vadd.f32 %v464_v10, %v311_v7 }
 0x153   :  { %v302_v14 = vpop.f32.mrf.mxu1 }
 0x154   :  { %v173_v15 = vmax.f32 %v171_v8, %v172_v11  ;;  %v166_v16 = vrot.slane %v165_v12, 2  ;;  %v320_v17 = vrot.slane %v313_v13, 4  ;;  %v312_v18 = vadd.f32 %v311_v7, %v302_v14 }
 0x156   :  { %v174_v19 = vrot.slane %v173_v15, 1  ;;  %v167_v20 = vmax.f32 %v165_v12, %v166_v16  ;;  %v321_v21 = vmax.f32 %v313_v13, %v320_v17  ;;  %v314_v22 = vrot.slane %v312_v18, 4 }
 0x158   :  { %v168_v23 = vrot.slane %v167_v20, 1  ;;  %v322_v24 = vrot.slane %v321_v21, 2  ;;  %v315_v25 = vmax.f32 %v312_v18, %v314_v22  ;;  %v175_v26 = vmax.f32 %v173_v15, %v174_v19 }
 0x15a   :  { %v169_v27 = vmax.f32 %v167_v20, %v168_v23  ;;  %v323_v28 = vmax.f32 %v321_v21, %v322_v24  ;;  %v316_v29 = vrot.slane %v315_v25, 2 }
 0x15c   :  { %v179_v30 = vsel %vm178_vm3, %v175_v26, %v169_v27  ;;  %v317_v31 = vmax.f32 %v315_v25, %v316_v29  ;;  %v324_v32 = vrot.slane %v323_v28, 1 }
 0x15d   :  { %181 = vst [vmem:[#allocation2] sm:$0x3] %v179_v30 }
 0x15e   :  { %v318_v33 = vrot.slane %v317_v31, 1  ;;  %v325_v35 = vmax.f32 %v323_v28, %v324_v32 }
 0x160   :  { %v319_v34 = vmax.f32 %v317_v31, %v318_v33 }
 0x162   :  { %v329_v37 = vsel %vm178_vm3, %v325_v35, %v319_v34 }
 0x164   :  { %v326_v36 = vld [vmem:[#allocation2] sm:$0x3] }
 0x165   :  { %v331_v38 = vmax.f32 %v326_v36, %v329_v37 }
 0x167   :  { %332 = vst [vmem:[#allocation2] sm:$0x3] %v331_v38 }
 0x16e   :  { %v333_v40 = vld [vmem:[#allocation2] sm:$0x3] }
 0x16f   :  { %v341_v41 = vadd.f32 %v358_v39, %v333_v40 }
 0x171   :  { %342 = vst [vmem:[#allocation6] sm:$0x3] %v341_v41 }
 0x172   :  { %533 = shalt.err (!%p530_p9)
}
 0x173   :  { %352 = dma.vmem_to_hbm [thread:$0]  %s350_s6, 32, %s654_s4, [#allocation5]  }
 0x174   :  { %544 = dma.done.wait [#allocation5], 32  }
 0x175   :  { %545 = vsyncadd [#allocation5], 4294967264 }
 0x176   :  { %356 = vsyncpa [#allocation4], 1 }
 0x177   :  { %357 = vsyncpa [#allocation5], 1 }

</bundles_post_ra>
